<compile_context>
chip_gen: v5e
topology: v5e:2x2
jax: 0.10.0
libtpu: 0.0.40
codegen_flags: <defaults>
</compile_context>

<pallas_src>
import jax
import jax.numpy as jnp
from jax import lax
from jax.experimental import pallas as pl
from jax.experimental.pallas import tpu as pltpu

LANE = 128


def _round_up(a: int, b: int) -> int:
    return (a + b - 1) // b * b


def _cdiv(a: int, b: int) -> int:
    return (a + b - 1) // b


def _pad2d(a, rows, cols, row_off=0, col_off=0):
    out = jnp.zeros((rows, cols), a.dtype)
    return out.at[row_off:row_off + a.shape[0], col_off:col_off + a.shape[1]].set(a)


def make_node_kernel(num_layers: int, tn: int, v_pad: int, cd_pad: int, g_pad: int):
    """Node-tiled kernel: embedding + count-encoder + conv stack + per-graph partial sums."""

    def kernel(*refs):
        (x_ref, counts_ref, batch_ref, emb_ref,
         cw1_ref, cb1_ref, cw2_ref, cb2_ref) = refs[:8]
        idx = 8
        conv_params = []
        for _ in range(num_layers):
            conv_params.append((refs[idx], refs[idx + 1]))
            idx += 2
        out_ref = refs[idx]          # (g_pad, LANE) partial sums for this core
        acc_ref = refs[idx + 1]      # VMEM scratch accumulator

        f32 = jnp.float32
        bf16 = jnp.bfloat16
        i = pl.program_id(1)         # node-tile index within this core (reduction axis)

        @pl.when(i == 0)
        def _():
            acc_ref[...] = jnp.zeros_like(acc_ref)

        # --- embedding gather as one-hot matmul on the MXU (table is VMEM-resident) ---
        v_iota = lax.broadcasted_iota(jnp.int32, (tn, v_pad), 1)
        onehot_x = (v_iota == x_ref[...]).astype(bf16)                       # (TN, V_pad)
        atom_h = jnp.dot(onehot_x, emb_ref[...], preferred_element_type=f32)  # lanes [0, emb)

        # --- count encoder (slim, f32): Linear -> ReLU -> Linear.  cw2/cb2 columns are
        #     pre-shifted to [emb_dim, emb_dim+count_dim): concat becomes an add. ---
        c = jnp.dot(counts_ref[...], cw1_ref[...], preferred_element_type=f32) + cb1_ref[...]
        c = jnp.maximum(c, 0.0)                                               # (TN, cd_pad)
        count_h = jnp.dot(c, cw2_ref[...], preferred_element_type=f32) + cb2_ref[...]

        h = atom_h + count_h                                                  # (TN, 128)

        # --- MLPLayer stack: h = h + relu(h @ W + b) ---
        for (w_ref, b_ref) in conv_params:
            z = jnp.dot(h.astype(bf16), w_ref[...], preferred_element_type=f32) + b_ref[...]
            h = h + jnp.maximum(z, 0.0)
        # TODO(synk): nn.Dropout / BatchNorm1d omitted (eval-mode no-op / batch_norm=False)

        # --- per-graph partial sums for this node tile (padded nodes carry batch == -1,
        #     so they match no graph row). h stays f32 here (free precision). ---
        g_iota = lax.broadcasted_iota(jnp.int32, (g_pad, tn), 0)
        onehot_g = (g_iota == batch_ref[...]).astype(f32)                     # (G_pad, TN)
        acc_ref[...] += jnp.dot(onehot_g, h, preferred_element_type=f32)

        @pl.when(i == pl.num_programs(1) - 1)
        def _():
            out_ref[...] = acc_ref[...]

    return kernel


def make_readout_kernel():
    """Tiny epilogue: combine per-core partials, scatter-mean, MLPReadout decoder."""

    def kernel(part_ref, inv_ref, w1, b1, w2, b2, w3, b3, out_ref):
        f32 = jnp.float32
        hg = jnp.sum(part_ref[...], axis=0) * inv_ref[...]                    # mean readout
        y = jnp.maximum(jnp.dot(hg, w1[...], preferred_element_type=f32) + b1[...], 0.0)
        y = jnp.maximum(jnp.dot(y, w2[...], preferred_element_type=f32) + b2[...], 0.0)
        out_ref[...] = jnp.dot(y, w3[...], preferred_element_type=f32) + b3[...]

    return kernel


def init_params(key, hidden_dim, count_dim, num_layers, feature_encoder_in_dim):
    """Deterministic synthetic parameter init (shapes follow MLPGraphReg.__init__)."""
    emb_dim = hidden_dim - count_dim  # expand_x=False
    ks = list(jax.random.split(key, 32))
    k = iter(ks)

    def lin(kk, fan_in, fan_out):
        s = 1.0 / jnp.sqrt(jnp.float32(fan_in))
        w = jax.random.uniform(kk, (fan_in, fan_out), jnp.float32, -s, s)
        b = jnp.zeros((1, fan_out), jnp.float32)
        return w, b

    params = {}
    params["embed"] = jax.random.normal(next(k), (feature_encoder_in_dim, emb_dim),
                                        jnp.float32) * 0.1
    params["cw1"], params["cb1"] = lin(next(k), count_dim, count_dim)
    params["cw2"], params["cb2"] = lin(next(k), count_dim, count_dim)

    conv = [lin(next(k), hidden_dim, hidden_dim)]            # first layer: concat_dim==hidden
    for _ in range(num_layers - 1):
        conv.append(lin(next(k), hidden_dim, hidden_dim))
    params["conv"] = conv

    ro = [lin(next(k), hidden_dim, hidden_dim // 2),
          lin(next(k), hidden_dim // 2, hidden_dim // 4),
          lin(next(k), hidden_dim // 4, 1)]
    params["readout"] = ro
    return params


def mlp_graph_reg_forward(x_idx, counts, batch, params, num_graphs, num_layers,
                          node_tile=None):
    """Pad / pre-layout everything to lane-dense form and run the fused Pallas kernels."""
    f32, bf16 = jnp.float32, jnp.bfloat16
    n = int(x_idx.shape[0])
    count_dim = int(counts.shape[1])
    v, emb_dim = params["embed"].shape

    if node_tile is None:
        # Large node tiles amortize the ~0.35 us per-grid-step overhead; per-tile VMEM
        # stays ~10 MiB at tn=4096, safe on v5e/v6e (128 MiB) and v7x (64 MiB).
        node_tile = min(4096, _round_up(max(n, 1), LANE))
    tn = node_tile

    # 2-way "parallel" split across TensorCores (v7x); sequential + harmless elsewhere.
    n_tiles = _cdiv(max(n, 1), tn)
    n_cores = 2 if n_tiles >= 2 else 1
    tiles_per_core = _cdiv(n_tiles, n_cores)
    n_pad = n_cores * tiles_per_core * tn

    v_pad = _round_up(v, 16)                       # bf16 sublane packing
    cd_pad = _round_up(count_dim, 8)
    g_pad = _round_up(max(num_graphs, 1), 8)

    # --- node-level inputs (streamed per tile) ---
    x_p = jnp.zeros((n_pad, 1), jnp.int32).at[:n, 0].set(x_idx.astype(jnp.int32))
    counts_p = _pad2d(counts.astype(f32), n_pad, cd_pad)       # slim + f32 (no 128-lane pad)
    batch_p = jnp.full((1, n_pad), -1, jnp.int32).at[0, :n].set(batch.astype(jnp.int32))

    # --- parameters; big conv weights bf16 for MXU, count encoder slim f32 ---
    emb_p = _pad2d(params["embed"], v_pad, LANE).astype(bf16)
    cw1_p = _pad2d(params["cw1"], cd_pad, cd_pad)
    cb1_p = _pad2d(params["cb1"], 1, cd_pad)
    cw2_p = _pad2d(params["cw2"], cd_pad, LANE, col_off=emb_dim)   # pre-shifted: concat == add
    cb2_p = _pad2d(params["cb2"], 1, LANE, col_off=emb_dim)        # pre-shifted

    conv_flat = []
    for (w, b) in params["conv"]:
        conv_flat += [_pad2d(w, LANE, LANE).astype(bf16), _pad2d(b, 1, LANE)]

    node_inputs = [x_p, counts_p, batch_p, emb_p, cw1_p, cb1_p, cw2_p, cb2_p] + conv_flat

    tpc = tiles_per_core
    node_in_specs = [
        pl.BlockSpec((tn, 1), lambda c, i: (c * tpc + i, 0)),        # node feature indices
        pl.BlockSpec((tn, cd_pad), lambda c, i: (c * tpc + i, 0)),   # homomorphism counts
        pl.BlockSpec((1, tn), lambda c, i: (0, c * tpc + i)),        # graph ids
    ] + [pl.BlockSpec(a.shape, lambda c, i: (0, 0)) for a in node_inputs[3:]]  # VMEM-resident

    node_kernel = make_node_kernel(num_layers, tn, v_pad, cd_pad, g_pad)

    partials = pl.pallas_call(
        node_kernel,
        grid=(n_cores, tiles_per_core),
        in_specs=node_in_specs,
        out_specs=pl.BlockSpec((None, g_pad, LANE), lambda c, i: (c, 0, 0)),
        out_shape=jax.ShapeDtypeStruct((n_cores, g_pad, LANE), f32),
        scratch_shapes=[pltpu.VMEM((g_pad, LANE), f32)],
        compiler_params=pltpu.CompilerParams(
            dimension_semantics=("parallel", "arbitrary"),   # cores x node-tiles(reduction)
            vmem_limit_bytes=32 * 1024 * 1024,
        ),
    )(*node_inputs)

    # --- epilogue: combine per-core partials, scatter-mean, MLPReadout decoder ---
    cnt = jnp.zeros((num_graphs,), f32).at[batch.astype(jnp.int32)].add(1.0)
    inv = 1.0 / jnp.maximum(cnt, 1.0)
    inv_p = jnp.zeros((g_pad, LANE), f32).at[:num_graphs, :].set(inv[:, None])

    ro_flat = []
    for (w, b) in params["readout"]:                 # tiny decoder kept in f32
        ro_flat += [_pad2d(w, LANE, LANE), _pad2d(b, 1, LANE)]

    ro_inputs = [partials, inv_p] + ro_flat
    ro_in_specs = [
        pl.BlockSpec(partials.shape, lambda i: (0, 0, 0)),
        pl.BlockSpec(inv_p.shape, lambda i: (0, 0)),
    ] + [pl.BlockSpec(a.shape, lambda i: (0, 0)) for a in ro_flat]

    out_padded = pl.pallas_call(
        make_readout_kernel(),
        grid=(1,),
        in_specs=ro_in_specs,
        out_specs=pl.BlockSpec((g_pad, LANE), lambda i: (0, 0)),
        out_shape=jax.ShapeDtypeStruct((g_pad, LANE), f32),
        compiler_params=pltpu.CompilerParams(dimension_semantics=("arbitrary",)),
    )(*ro_inputs)

    return out_padded[:num_graphs, :1]


def reference_forward(x_idx, counts, batch, params, num_graphs):
    atom_h = params["embed"][x_idx]
    c = jnp.maximum(counts @ params["cw1"] + params["cb1"], 0.0)
    count_h = c @ params["cw2"] + params["cb2"]
    h = jnp.concatenate([atom_h, count_h], axis=1)
    for (w, b) in params["conv"]:
        h_in = h
        h = jnp.maximum(h @ w + b, 0.0)
        if h.shape[1] == h_in.shape[1]:
            h = h_in + h
    onehot = (jnp.arange(num_graphs)[:, None] == batch[None, :]).astype(jnp.float32)
    hg = (onehot @ h) / jnp.maximum(onehot.sum(axis=1, keepdims=True), 1.0)
    y = hg
    for li, (w, b) in enumerate(params["readout"]):
        y = y @ w + b
        if li < 2:
            y = jnp.maximum(y, 0.0)
    return y


if __name__ == "__main__":
    hidden_dim = 32
    count_dim = 8
    num_layers = 3
    feature_encoder_in_dim = 28

    key = jax.random.PRNGKey(0)
    k_params, k_x, k_counts, k_x2, k_c2, k_b2 = jax.random.split(key, 6)
    params = init_params(k_params, hidden_dim, count_dim, num_layers,
                         feature_encoder_in_dim)

    # --- test 1: small graph batch (single node tile, single core) ---
    num_nodes, num_graphs = 16, 4
    x_idx = jax.random.randint(k_x, (num_nodes,), 0, feature_encoder_in_dim)
    counts = jax.random.normal(k_counts, (num_nodes, count_dim), jnp.float32)
    batch = jnp.repeat(jnp.arange(num_graphs, dtype=jnp.int32), num_nodes // num_graphs)

    out = mlp_graph_reg_forward(x_idx, counts, batch, params, num_graphs, num_layers)
    out = jax.block_until_ready(out)
    ref = reference_forward(x_idx, counts, batch, params, num_graphs)
    assert out.shape == (num_graphs, 1)
    assert bool(jnp.all(jnp.isfinite(out)))
    assert bool(jnp.allclose(out, ref, atol=2e-2, rtol=2e-2)), (out, ref)

    # --- test 2: larger, unsorted graph batch exercising the multi-tile, two-core
    #             partial-accumulator path (padded nodes + padded tiles). ---
    n2, g2 = 300, 5
    x2 = jax.random.randint(k_x2, (n2,), 0, feature_encoder_in_dim)
    c2 = jax.random.normal(k_c2, (n2, count_dim), jnp.float32)
    b2 = jax.random.randint(k_b2, (n2,), 0, g2).astype(jnp.int32)
    out2 = mlp_graph_reg_forward(x2, c2, b2, params, g2, num_layers, node_tile=128)
    out2 = jax.block_until_ready(out2)
    ref2 = reference_forward(x2, c2, b2, params, g2)
    assert out2.shape == (g2, 1)
    assert bool(jnp.all(jnp.isfinite(out2)))
    assert bool(jnp.allclose(out2, ref2, atol=2e-2, rtol=2e-2)), (out2, ref2)

    print("KERNEL_OK")
</pallas_src>

<mosaic_0001>
module attributes {stable_mosaic.version = 11 : i64} {
  func.func @kernel(%arg0: i32, %arg1: i32, %arg2: memref<128x1xi32, #tpu.memory_space<vmem>>, %arg3: memref<128x8xf32, #tpu.memory_space<vmem>>, %arg4: memref<1x128xi32, #tpu.memory_space<vmem>>, %arg5: memref<32x128xbf16, #tpu.memory_space<vmem>>, %arg6: memref<8x8xf32, #tpu.memory_space<vmem>>, %arg7: memref<1x8xf32, #tpu.memory_space<vmem>>, %arg8: memref<8x128xf32, #tpu.memory_space<vmem>>, %arg9: memref<1x128xf32, #tpu.memory_space<vmem>>, %arg10: memref<128x128xbf16, #tpu.memory_space<vmem>>, %arg11: memref<1x128xf32, #tpu.memory_space<vmem>>, %arg12: memref<128x128xbf16, #tpu.memory_space<vmem>>, %arg13: memref<1x128xf32, #tpu.memory_space<vmem>>, %arg14: memref<128x128xbf16, #tpu.memory_space<vmem>>, %arg15: memref<1x128xf32, #tpu.memory_space<vmem>>, %arg16: memref<1x8x128xf32, #tpu.memory_space<vmem>>, %arg17: memref<8x128xf32, #tpu.memory_space<vmem>>) attributes {dimension_semantics = [#tpu.dimension_semantics<parallel>, #tpu.dimension_semantics<arbitrary>], iteration_bounds = array<i64: 1, 1>, scalar_prefetch = 0 : i64, scratch_operands = 1 : i64, tpu.core_type = #tpu.core_type<tc>, window_params = [{transform_indices = @transform_0, window_bounds = array<i64: 128, 1>}, {transform_indices = @transform_1, window_bounds = array<i64: 128, 8>}, {transform_indices = @transform_2, window_bounds = array<i64: 1, 128>}, {pipeline_mode = #tpu.pipeline_mode<synchronous>, transform_indices = @transform_3, window_bounds = array<i64: 32, 128>}, {pipeline_mode = #tpu.pipeline_mode<synchronous>, transform_indices = @transform_4, window_bounds = array<i64: 8, 8>}, {pipeline_mode = #tpu.pipeline_mode<synchronous>, transform_indices = @transform_5, window_bounds = array<i64: 1, 8>}, {pipeline_mode = #tpu.pipeline_mode<synchronous>, transform_indices = @transform_6, window_bounds = array<i64: 8, 128>}, {pipeline_mode = #tpu.pipeline_mode<synchronous>, transform_indices = @transform_7, window_bounds = array<i64: 1, 128>}, {pipeline_mode = #tpu.pipeline_mode<synchronous>, transform_indices = @transform_8, window_bounds = array<i64: 128, 128>}, {pipeline_mode = #tpu.pipeline_mode<synchronous>, transform_indices = @transform_9, window_bounds = array<i64: 1, 128>}, {pipeline_mode = #tpu.pipeline_mode<synchronous>, transform_indices = @transform_10, window_bounds = array<i64: 128, 128>}, {pipeline_mode = #tpu.pipeline_mode<synchronous>, transform_indices = @transform_11, window_bounds = array<i64: 1, 128>}, {pipeline_mode = #tpu.pipeline_mode<synchronous>, transform_indices = @transform_12, window_bounds = array<i64: 128, 128>}, {pipeline_mode = #tpu.pipeline_mode<synchronous>, transform_indices = @transform_13, window_bounds = array<i64: 1, 128>}, {transform_indices = @transform_14, window_bounds = array<i64: 1, 8, 128>}]} {
    %c0_i32 = arith.constant 0 : i32
    %0 = arith.cmpi eq, %arg1, %c0_i32 : i32
    %1 = arith.extui %0 : i1 to i32
    %c0_i32_0 = arith.constant 0 : i32
    %2 = arith.cmpi ne, %1, %c0_i32_0 : i32
    scf.if %2 {
      %cst_44 = arith.constant 0.000000e+00 : f32
      %66 = vector.broadcast %cst_44 : f32 to vector<8x128xf32>
      %c0_45 = arith.constant 0 : index
      %c0_46 = arith.constant 0 : index
      %67 = vector.load %arg17[%c0_45, %c0_46] : memref<8x128xf32, #tpu.memory_space<vmem>>, vector<8x128xf32>
      tpu.vector_store %arg17[%c0_45, %c0_46], %66 {strides = array<i32>} : memref<8x128xf32, #tpu.memory_space<vmem>>, vector<8x128xf32>,
    } else {
    }
    %3 = tpu.iota {dimensions = array<i32: 1>} : vector<128x32xi32>
    %c0 = arith.constant 0 : index
    %c0_1 = arith.constant 0 : index
    %4 = vector.load %arg2[%c0, %c0_1] : memref<128x1xi32, #tpu.memory_space<vmem>>, vector<128x1xi32>
    %5 = vector.broadcast %4 : vector<128x1xi32> to vector<128x32xi32>
    %6 = arith.cmpi eq, %3, %5 : vector<128x32xi32>
    %7 = arith.extui %6 : vector<128x32xi1> to vector<128x32xi32>
    %8 = arith.sitofp %7 : vector<128x32xi32> to vector<128x32xf32>
    %9 = arith.truncf %8 : vector<128x32xf32> to vector<128x32xbf16>
    %c0_2 = arith.constant 0 : index
    %c0_3 = arith.constant 0 : index
    %10 = vector.load %arg5[%c0_2, %c0_3] : memref<32x128xbf16, #tpu.memory_space<vmem>>, vector<32x128xbf16>
    %cst = arith.constant dense<0.000000e+00> : vector<128x128xf32>
    %11 = tpu.matmul %9, %10, %cst {dimension_numbers = #tpu.dot_dimension_numbers<[1], [0], [0], [1], [0, 0, 1, 1], [], []>} : vector<128x32xbf16>, vector<32x128xbf16>, vector<128x128xf32> -> vector<128x128xf32>
    %c0_4 = arith.constant 0 : index
    %c0_5 = arith.constant 0 : index
    %12 = vector.load %arg3[%c0_4, %c0_5] : memref<128x8xf32, #tpu.memory_space<vmem>>, vector<128x8xf32>
    %c0_6 = arith.constant 0 : index
    %c0_7 = arith.constant 0 : index
    %13 = vector.load %arg6[%c0_6, %c0_7] : memref<8x8xf32, #tpu.memory_space<vmem>>, vector<8x8xf32>
    %cst_8 = arith.constant dense<0.000000e+00> : vector<128x8xf32>
    %14 = tpu.matmul %12, %13, %cst_8 {dimension_numbers = #tpu.dot_dimension_numbers<[1], [0], [0], [1], [0, 0, 1, 1], [], []>} : vector<128x8xf32>, vector<8x8xf32>, vector<128x8xf32> -> vector<128x8xf32>
    %c0_9 = arith.constant 0 : index
    %c0_10 = arith.constant 0 : index
    %15 = vector.load %arg7[%c0_9, %c0_10] : memref<1x8xf32, #tpu.memory_space<vmem>>, vector<1x8xf32>
    %16 = vector.broadcast %15 : vector<1x8xf32> to vector<128x8xf32>
    %17 = arith.addf %14, %16 : vector<128x8xf32>
    %cst_11 = arith.constant 0.000000e+00 : f32
    %18 = vector.broadcast %cst_11 : f32 to vector<128x8xf32>
    %19 = arith.maximumf %17, %18 : vector<128x8xf32>
    %c0_12 = arith.constant 0 : index
    %c0_13 = arith.constant 0 : index
    %20 = vector.load %arg8[%c0_12, %c0_13] : memref<8x128xf32, #tpu.memory_space<vmem>>, vector<8x128xf32>
    %cst_14 = arith.constant dense<0.000000e+00> : vector<128x128xf32>
    %21 = tpu.matmul %19, %20, %cst_14 {dimension_numbers = #tpu.dot_dimension_numbers<[1], [0], [0], [1], [0, 0, 1, 1], [], []>} : vector<128x8xf32>, vector<8x128xf32>, vector<128x128xf32> -> vector<128x128xf32>
    %c0_15 = arith.constant 0 : index
    %c0_16 = arith.constant 0 : index
    %22 = vector.load %arg9[%c0_15, %c0_16] : memref<1x128xf32, #tpu.memory_space<vmem>>, vector<1x128xf32>
    %23 = vector.broadcast %22 : vector<1x128xf32> to vector<128x128xf32>
    %24 = arith.addf %21, %23 : vector<128x128xf32>
    %25 = arith.addf %11, %24 : vector<128x128xf32>
    %26 = arith.truncf %25 : vector<128x128xf32> to vector<128x128xbf16>
    %c0_17 = arith.constant 0 : index
    %c0_18 = arith.constant 0 : index
    %27 = vector.load %arg10[%c0_17, %c0_18] : memref<128x128xbf16, #tpu.memory_space<vmem>>, vector<128x128xbf16>
    %cst_19 = arith.constant dense<0.000000e+00> : vector<128x128xf32>
    %28 = tpu.matmul %26, %27, %cst_19 {dimension_numbers = #tpu.dot_dimension_numbers<[1], [0], [0], [1], [0, 0, 1, 1], [], []>} : vector<128x128xbf16>, vector<128x128xbf16>, vector<128x128xf32> -> vector<128x128xf32>
    %c0_20 = arith.constant 0 : index
    %c0_21 = arith.constant 0 : index
    %29 = vector.load %arg11[%c0_20, %c0_21] : memref<1x128xf32, #tpu.memory_space<vmem>>, vector<1x128xf32>
    %30 = vector.broadcast %29 : vector<1x128xf32> to vector<128x128xf32>
    %31 = arith.addf %28, %30 : vector<128x128xf32>
    %cst_22 = arith.constant 0.000000e+00 : f32
    %32 = vector.broadcast %cst_22 : f32 to vector<128x128xf32>
    %33 = arith.maximumf %31, %32 : vector<128x128xf32>
    %34 = arith.addf %25, %33 : vector<128x128xf32>
    %35 = arith.truncf %34 : vector<128x128xf32> to vector<128x128xbf16>
    %c0_23 = arith.constant 0 : index
    %c0_24 = arith.constant 0 : index
    %36 = vector.load %arg12[%c0_23, %c0_24] : memref<128x128xbf16, #tpu.memory_space<vmem>>, vector<128x128xbf16>
    %cst_25 = arith.constant dense<0.000000e+00> : vector<128x128xf32>
    %37 = tpu.matmul %35, %36, %cst_25 {dimension_numbers = #tpu.dot_dimension_numbers<[1], [0], [0], [1], [0, 0, 1, 1], [], []>} : vector<128x128xbf16>, vector<128x128xbf16>, vector<128x128xf32> -> vector<128x128xf32>
    %c0_26 = arith.constant 0 : index
    %c0_27 = arith.constant 0 : index
    %38 = vector.load %arg13[%c0_26, %c0_27] : memref<1x128xf32, #tpu.memory_space<vmem>>, vector<1x128xf32>
    %39 = vector.broadcast %38 : vector<1x128xf32> to vector<128x128xf32>
    %40 = arith.addf %37, %39 : vector<128x128xf32>
    %cst_28 = arith.constant 0.000000e+00 : f32
    %41 = vector.broadcast %cst_28 : f32 to vector<128x128xf32>
    %42 = arith.maximumf %40, %41 : vector<128x128xf32>
    %43 = arith.addf %34, %42 : vector<128x128xf32>
    %44 = arith.truncf %43 : vector<128x128xf32> to vector<128x128xbf16>
    %c0_29 = arith.constant 0 : index
    %c0_30 = arith.constant 0 : index
    %45 = vector.load %arg14[%c0_29, %c0_30] : memref<128x128xbf16, #tpu.memory_space<vmem>>, vector<128x128xbf16>
    %cst_31 = arith.constant dense<0.000000e+00> : vector<128x128xf32>
    %46 = tpu.matmul %44, %45, %cst_31 {dimension_numbers = #tpu.dot_dimension_numbers<[1], [0], [0], [1], [0, 0, 1, 1], [], []>} : vector<128x128xbf16>, vector<128x128xbf16>, vector<128x128xf32> -> vector<128x128xf32>
    %c0_32 = arith.constant 0 : index
    %c0_33 = arith.constant 0 : index
    %47 = vector.load %arg15[%c0_32, %c0_33] : memref<1x128xf32, #tpu.memory_space<vmem>>, vector<1x128xf32>
    %48 = vector.broadcast %47 : vector<1x128xf32> to vector<128x128xf32>
    %49 = arith.addf %46, %48 : vector<128x128xf32>
    %cst_34 = arith.constant 0.000000e+00 : f32
    %50 = vector.broadcast %cst_34 : f32 to vector<128x128xf32>
    %51 = arith.maximumf %49, %50 : vector<128x128xf32>
    %52 = arith.addf %43, %51 : vector<128x128xf32>
    %53 = tpu.iota {dimensions = array<i32: 0>} : vector<8x128xi32>
    %c0_35 = arith.constant 0 : index
    %c0_36 = arith.constant 0 : index
    %54 = vector.load %arg4[%c0_35, %c0_36] : memref<1x128xi32, #tpu.memory_space<vmem>>, vector<1x128xi32>
    %55 = vector.broadcast %54 : vector<1x128xi32> to vector<8x128xi32>
    %56 = arith.cmpi eq, %53, %55 : vector<8x128xi32>
    %57 = arith.extui %56 : vector<8x128xi1> to vector<8x128xi32>
    %58 = arith.sitofp %57 : vector<8x128xi32> to vector<8x128xf32>
    %c0_37 = arith.constant 0 : index
    %c0_38 = arith.constant 0 : index
    %59 = vector.load %arg17[%c0_37, %c0_38] : memref<8x128xf32, #tpu.memory_space<vmem>>, vector<8x128xf32>
    %cst_39 = arith.constant dense<0.000000e+00> : vector<8x128xf32>
    %60 = tpu.matmul %58, %52, %cst_39 {dimension_numbers = #tpu.dot_dimension_numbers<[1], [0], [0], [1], [0, 0, 1, 1], [], []>} : vector<8x128xf32>, vector<128x128xf32>, vector<8x128xf32> -> vector<8x128xf32>
    %61 = arith.addf %59, %60 : vector<8x128xf32>
    %c0_40 = arith.constant 0 : index
    %c0_41 = arith.constant 0 : index
    %62 = vector.load %arg17[%c0_40, %c0_41] : memref<8x128xf32, #tpu.memory_space<vmem>>, vector<8x128xf32>
    tpu.vector_store %arg17[%c0_40, %c0_41], %61 {strides = array<i32>} : memref<8x128xf32, #tpu.memory_space<vmem>>, vector<8x128xf32>,
    %c0_i32_42 = arith.constant 0 : i32
    %63 = arith.cmpi eq, %arg1, %c0_i32_42 : i32
    %64 = arith.extui %63 : i1 to i32
    %c0_i32_43 = arith.constant 0 : i32
    %65 = arith.cmpi ne, %64, %c0_i32_43 : i32
    scf.if %65 {
      %c0_44 = arith.constant 0 : index
      %c0_45 = arith.constant 0 : index
      %66 = vector.load %arg17[%c0_44, %c0_45] : memref<8x128xf32, #tpu.memory_space<vmem>>, vector<8x128xf32>
      %c0_46 = arith.constant 0 : index
      %c0_47 = arith.constant 0 : index
      %c0_48 = arith.constant 0 : index
      %67 = vector.load %arg16[%c0_46, %c0_47, %c0_48] : memref<1x8x128xf32, #tpu.memory_space<vmem>>, vector<1x8x128xf32>
      %68 = vector.shape_cast %67 : vector<1x8x128xf32> to vector<8x128xf32>
      %69 = vector.shape_cast %66 : vector<8x128xf32> to vector<1x8x128xf32>
      tpu.vector_store %arg16[%c0_46, %c0_47, %c0_48], %69 {strides = array<i32>} : memref<1x8x128xf32, #tpu.memory_space<vmem>>, vector<1x8x128xf32>,
    } else {
    }
    return
  }
  func.func @transform_0(%arg0: i32, %arg1: i32) -> (i32, i32) {
    %c1_i32 = arith.constant 1 : i32
    %0 = arith.muli %arg0, %c1_i32 : i32
    %1 = arith.addi %0, %arg1 : i32
    %c0_i32 = arith.constant 0 : i32
    %c0_i32_0 = arith.constant 0 : i32
    return %1, %c0_i32 : i32, i32
  }
  func.func @transform_1(%arg0: i32, %arg1: i32) -> (i32, i32) {
    %c1_i32 = arith.constant 1 : i32
    %0 = arith.muli %arg0, %c1_i32 : i32
    %1 = arith.addi %0, %arg1 : i32
    %c0_i32 = arith.constant 0 : i32
    %c0_i32_0 = arith.constant 0 : i32
    return %1, %c0_i32 : i32, i32
  }
  func.func @transform_2(%arg0: i32, %arg1: i32) -> (i32, i32) {
    %c1_i32 = arith.constant 1 : i32
    %0 = arith.muli %arg0, %c1_i32 : i32
    %1 = arith.addi %0, %arg1 : i32
    %c0_i32 = arith.constant 0 : i32
    %c0_i32_0 = arith.constant 0 : i32
    return %c0_i32, %1 : i32, i32
  }
  func.func @transform_3(%arg0: i32, %arg1: i32) -> (i32, i32) {
    %c0_i32 = arith.constant 0 : i32
    %c0_i32_0 = arith.constant 0 : i32
    %c0_i32_1 = arith.constant 0 : i32
    return %c0_i32, %c0_i32_0 : i32, i32
  }
  func.func @transform_4(%arg0: i32, %arg1: i32) -> (i32, i32) {
    %c0_i32 = arith.constant 0 : i32
    %c0_i32_0 = arith.constant 0 : i32
    %c0_i32_1 = arith.constant 0 : i32
    return %c0_i32, %c0_i32_0 : i32, i32
  }
  func.func @transform_5(%arg0: i32, %arg1: i32) -> (i32, i32) {
    %c0_i32 = arith.constant 0 : i32
    %c0_i32_0 = arith.constant 0 : i32
    %c0_i32_1 = arith.constant 0 : i32
    return %c0_i32, %c0_i32_0 : i32, i32
  }
  func.func @transform_6(%arg0: i32, %arg1: i32) -> (i32, i32) {
    %c0_i32 = arith.constant 0 : i32
    %c0_i32_0 = arith.constant 0 : i32
    %c0_i32_1 = arith.constant 0 : i32
    return %c0_i32, %c0_i32_0 : i32, i32
  }
  func.func @transform_7(%arg0: i32, %arg1: i32) -> (i32, i32) {
    %c0_i32 = arith.constant 0 : i32
    %c0_i32_0 = arith.constant 0 : i32
    %c0_i32_1 = arith.constant 0 : i32
    return %c0_i32, %c0_i32_0 : i32, i32
  }
  func.func @transform_8(%arg0: i32, %arg1: i32) -> (i32, i32) {
    %c0_i32 = arith.constant 0 : i32
    %c0_i32_0 = arith.constant 0 : i32
    %c0_i32_1 = arith.constant 0 : i32
    return %c0_i32, %c0_i32_0 : i32, i32
  }
  func.func @transform_9(%arg0: i32, %arg1: i32) -> (i32, i32) {
    %c0_i32 = arith.constant 0 : i32
    %c0_i32_0 = arith.constant 0 : i32
    %c0_i32_1 = arith.constant 0 : i32
    return %c0_i32, %c0_i32_0 : i32, i32
  }
  func.func @transform_10(%arg0: i32, %arg1: i32) -> (i32, i32) {
    %c0_i32 = arith.constant 0 : i32
    %c0_i32_0 = arith.constant 0 : i32
    %c0_i32_1 = arith.constant 0 : i32
    return %c0_i32, %c0_i32_0 : i32, i32
  }
  func.func @transform_11(%arg0: i32, %arg1: i32) -> (i32, i32) {
    %c0_i32 = arith.constant 0 : i32
    %c0_i32_0 = arith.constant 0 : i32
    %c0_i32_1 = arith.constant 0 : i32
    return %c0_i32, %c0_i32_0 : i32, i32
  }
  func.func @transform_12(%arg0: i32, %arg1: i32) -> (i32, i32) {
    %c0_i32 = arith.constant 0 : i32
    %c0_i32_0 = arith.constant 0 : i32
    %c0_i32_1 = arith.constant 0 : i32
    return %c0_i32, %c0_i32_0 : i32, i32
  }
  func.func @transform_13(%arg0: i32, %arg1: i32) -> (i32, i32) {
    %c0_i32 = arith.constant 0 : i32
    %c0_i32_0 = arith.constant 0 : i32
    %c0_i32_1 = arith.constant 0 : i32
    return %c0_i32, %c0_i32_0 : i32, i32
  }
  func.func @transform_14(%arg0: i32, %arg1: i32) -> (i32, i32, i32) {
    %c0_i32 = arith.constant 0 : i32
    %c0_i32_0 = arith.constant 0 : i32
    %c0_i32_1 = arith.constant 0 : i32
    return %arg0, %c0_i32, %c0_i32_0 : i32, i32, i32
  }
}

</mosaic_0001>

<bundles_post_ra>
// kernel: tpu_custom_call.1
= control target key start
LH: loop header
LB: loop body
LE: loop exit
PB: predicated region body
PF: predicated region fallthrough
CT: control target
= control target key end

     0   :  { %vm259_vm0 = vcmask 64512   ;;  %v1359_v3 = vmov 0   ;;  %s2008_s0 = inlined_call_operand.vmem [shape: s32[128,1], index: 0, kind: input, shape index: {}]   ;;  %s2009_s1 = inlined_call_operand.vmem [shape: f32[128,8], index: 1, kind: input, shape index: {}]   ;;  %s2010_s2 = inlined_call_operand.vmem [shape: s32[1,128], index: 2, kind: input, shape index: {}]   ;;  %s2011_s3 = inlined_call_operand.vmem [shape: bf16[32,128], index: 3, kind: input, shape index: {}]   ;;  %s2012_s4 = inlined_call_operand.vmem [shape: f32[8,8], index: 4, kind: input, shape index: {}]   ;;  %s2013_s5 = inlined_call_operand.vmem [shape: f32[1,8], index: 5, kind: input, shape index: {}]   ;;  %s2014_s6 = inlined_call_operand.vmem [shape: f32[8,128], index: 6, kind: input, shape index: {}]   ;;  %s2015_s7 = inlined_call_operand.vmem [shape: f32[1,128], index: 7, kind: input, shape index: {}]   ;;  %s2016_s8 = inlined_call_operand.vmem [shape: bf16[128,128], index: 8, kind: input, shape index: {}]   ;;  %s2017_s9 = inlined_call_operand.vmem [shape: f32[1,128], index: 9, kind: input, shape index: {}]   ;;  %s2018_s10 = inlined_call_operand.vmem [shape: bf16[128,128], index: 10, kind: input, shape index: {}]   ;;  %s2019_s11 = inlined_call_operand.vmem [shape: f32[1,128], index: 11, kind: input, shape index: {}]   ;;  %s2020_s12 = inlined_call_operand.vmem [shape: bf16[128,128], index: 12, kind: input, shape index: {}]   ;;  %s2021_s13 = inlined_call_operand.vmem [shape: f32[1,128], index: 13, kind: input, shape index: {}]   ;;  %s2022_s14 = inlined_call_operand.hbm [shape: f32[1,8,128], index: 14, kind: output, shape index: {}]  }
   0x1   :  { %v254_v0 = vld [vmem:[%s2012_s4] sm:$0xff]  ;;  %v116_v1 = vld [vmem:[%s2008_s0 + $0x10] sm:$0xff]  ;;  %1325 = vset.pattern.permute.xlu1 %v1359_v3  ;;  %1324 = vset.pattern.permute.xlu0 %v1359_v3  ;;  %v117_v6 = vld [vmem:[%s2008_s0 + $0x18] sm:$0xff] }
   0x2   :  { %v114_v2 = vld [vmem:[%s2008_s0] sm:$0xff]  ;;  %323 = vmatpush.msra.mxu0 %v254_v0  ;;  %137 = vperm.xlu1 %1325, %v116_v1   ;;  %v115_v7 = vld [vmem:[%s2008_s0 + $0x8] sm:$0xff] }
   0x3   :  { %v238_v4 = vld [vmem:[%s2009_s1] sm:$0xff]  ;;  %131 = vperm.xlu0 %1324, %v114_v2   ;;  %1326 = vset.pattern.permute.xlu2 %v1359_v3  ;;  %v239_v8 = vld [vmem:[%s2009_s1 + $0x8] sm:$0xff] }
   0x4   :  { %1146 = vmatmul.msk.f32.vlgmr.msra.gmra.mxu0 %vm259_vm0, %v238_v4  ;;  %v118_v5 = vld [vmem:[%s2008_s0 + $0x20] sm:$0xff]  ;;  %1318 = vmatpush.msra.mxu2 %v254_v0 }
   0x5   :  { %143 = vperm.xlu2 %1326, %v118_v5  }
   0x6   :  { %19 = vsyncpa [#allocation4], 0  ;;  %v119_v9 = vld [vmem:[%s2008_s0 + $0x28] sm:$0xff]  ;;  %v121_v10 = vld [vmem:[%s2008_s0 + $0x38] sm:$0xff]  ;;  %v112_v39 = vlaneseq  ;;  %v1360_v42 = vmov 0.0   ;;  %vm519_vm5 = vcmask 261120  }
   0x7   :  { %v120_v11 = vld [vmem:[%s2008_s0 + $0x30] sm:$0xff]  ;;  %v122_v13 = vld [vmem:[%s2008_s0 + $0x40] sm:$0xff]  ;;  %v123_v15 = vld [vmem:[%s2008_s0 + $0x48] sm:$0xff]  ;;  %s1362_s18 = smov [#allocation3]   ;;  %s1106_s21 = sshll.u32 %s2022_s14, 4  ;;  %s1107_s21 = int_to_ptr.hbm [resolvable:$true] %s1106_s21 }
   0x8   :  { %v240_v12 = vld [vmem:[%s2009_s1 + $0x10] sm:$0xff]  ;;  %v241_v16 = vld [vmem:[%s2009_s1 + $0x18] sm:$0xff]  ;;  %v247_v18 = vld [vmem:[%s2009_s1 + $0x48] sm:$0xff]  ;;  %v1567_v40 = vand.u32 127, %v112_v39  ;;  %s1104_s19 = sshll.u32 %s1362_s18, 4  ;;  %s1105_s19 = int_to_ptr.vmem [resolvable:$true] %s1104_s19 }
   0x9   :  { %v124_v14 = vld [vmem:[%s2008_s0 + $0x50] sm:$0xff]  ;;  %v125_v17 = vld [vmem:[%s2008_s0 + $0x58] sm:$0xff]  ;;  %1155 = vmatmul.msk.f32.vlgmr.msra.gmra.mxu2 %vm259_vm0, %v247_v18  ;;  %v127_v19 = vld [vmem:[%s2008_s0 + $0x68] sm:$0xff] }
   0xa   :  { %140 = vperm.xlu1 %1325, %v117_v6   ;;  %v126_v20 = vld [vmem:[%s2008_s0 + $0x60] sm:$0xff]  ;;  %v128_v22 = vld [vmem:[%s2008_s0 + $0x70] sm:$0xff]  ;;  %v129_v24 = vld [vmem:[%s2008_s0 + $0x78] sm:$0xff] }
   0xb   :  { %134 = vperm.xlu0 %1324, %v115_v7   ;;  %v242_v21 = vld [vmem:[%s2009_s1 + $0x20] sm:$0xff]  ;;  %v248_v23 = vld [vmem:[%s2009_s1 + $0x50] sm:$0xff]  ;;  %v243_v25 = vld [vmem:[%s2009_s1 + $0x28] sm:$0xff] }
   0xc   :  { %1147 = vmatmul.msk.f32.gmra.mxu0 %vm259_vm0, %v239_v8  ;;  %v249_v26 = vld [vmem:[%s2009_s1 + $0x58] sm:$0xff]  ;;  %v244_v27 = vld [vmem:[%s2009_s1 + $0x30] sm:$0xff]  ;;  %v250_v28 = vld [vmem:[%s2009_s1 + $0x60] sm:$0xff] }
   0xd   :  { %146 = vperm.xlu2 %1326, %v119_v9   ;;  %v245_v29 = vld [vmem:[%s2009_s1 + $0x38] sm:$0xff]  ;;  %v251_v30 = vld [vmem:[%s2009_s1 + $0x68] sm:$0xff]  ;;  %v246_v31 = vld [vmem:[%s2009_s1 + $0x40] sm:$0xff] }
   0xe   :  { %v252_v32 = vld [vmem:[%s2009_s1 + $0x70] sm:$0xff]  ;;  %v253_v33 = vld [vmem:[%s2009_s1 + $0x78] sm:$0xff]  ;;  %v1293_v34 = vld [vmem:[%s2011_s3 + $0x8] sm:$0xff] }
   0xf   :  { %550 = vmatpush.bf16.msrb.mxu2 %v1293_v34  ;;  %v1292_v35 = vld [vmem:[%s2011_s3] sm:$0xff] }
  0x10   :  { %v389_v37 = vld [vmem:[%s2014_s6] sm:$0xff] }
  0x11   :  { %1156 = vmatmul.msk.f32.gmra.mxu2 %vm259_vm0, %v248_v23  ;;  %457 = vmatpush.msra.mxu1 %v389_v37  ;;  %v1581_v50 = vld [vmem:[%s2013_s5] ss:$0 sm:$0xff] }
  0x12   :  { %152 = vperm.xlu1 %1325, %v121_v10   ;;  %1319 = vmatpush.msra.mxu3 %v389_v37 }
  0x13   :  { %149 = vperm.xlu0 %1324, %v120_v11   ;;  %551 = vmatpush.bf16.msrb.mxu2 %v1292_v35 }
  0x14   :  { %1148 = vmatmul.msk.f32.gmra.mxu0 %vm259_vm0, %v240_v12 }
  0x15   :  { %155 = vperm.xlu2 %1326, %v122_v13  }
  0x19   :  { %1157 = vmatmul.msk.f32.gmra.mxu2 %vm259_vm0, %v249_v26 }
  0x1a   :  { %161 = vperm.xlu1 %1325, %v124_v14  }
  0x1b   :  { %158 = vperm.xlu0 %1324, %v123_v15  }
  0x1c   :  { %1149 = vmatmul.msk.f32.gmra.mxu0 %vm259_vm0, %v241_v16 }
  0x1d   :  { %164 = vperm.xlu2 %1326, %v125_v17  }
  0x21   :  { %1158 = vmatmul.msk.f32.gmra.mxu2 %vm259_vm0, %v250_v28 }
  0x22   :  { %170 = vperm.xlu1 %1325, %v127_v19  }
  0x23   :  { %167 = vperm.xlu0 %1324, %v126_v20  }
  0x24   :  { %1150 = vmatmul.msk.f32.gmra.mxu0 %vm259_vm0, %v242_v21 }
  0x25   :  { %173 = vperm.xlu2 %1326, %v128_v22  }
  0x29   :  { %1159 = vmatmul.msk.f32.gmra.mxu2 %vm259_vm0, %v251_v30 }
  0x2b   :  { %176 = vperm.xlu0 %1324, %v129_v24  }
  0x2c   :  { %1151 = vmatmul.msk.f32.gmra.mxu0 %vm259_vm0, %v243_v25 }
  0x31   :  { %1160 = vmatmul.msk.f32.gmra.mxu2 %vm259_vm0, %v252_v32 }
  0x34   :  { %1152 = vmatmul.msk.f32.gmra.mxu0 %vm259_vm0, %v244_v27 }
  0x39   :  { %1161 = vmatmul.msk.f32.gmra.mxu2 %vm259_vm0, %v253_v33 }
  0x3c   :  { %1153 = vmatmul.msk.f32.gmra.mxu0 %vm259_vm0, %v245_v29 }
  0x44   :  { %1154 = vmatmul.msk.f32.gmra.mxu0 %vm259_vm0, %v246_v31 }
  0x5f   :  { %v1559_v36 = vpop.permute.xlu2 %143 }
  0x60   :  { %vm182_vm13 = vcmp.eq.s32.totalorder %v1567_v40, %v1559_v36 }
  0x61   :  { %v1134_v20 = vsel %vm182_vm13, 1.0, %v1360_v42 }
  0x67   :  { %v1564_v38 = vpop.permute.xlu2 %146 }
  0x68   :  { %vm183_vm14 = vcmp.eq.s32.totalorder %v1567_v40, %v1564_v38 }
  0x69   :  { %v1135_v21 = vsel %vm183_vm14, 1.0, %v1360_v42 }
  0x6a   :  { %v228_v24 = vpack.c.bf16 %v1135_v21, %v1134_v20 }
  0x6f   :  { %v156_v41 = vpop.permute.xlu2 %155 }
  0x70   :  { %vm186_vm1 = vcmp.eq.s32.totalorder %v1567_v40, %v156_v41 }
  0x71   :  { %v1571_v43 = vsel %vm186_vm1, 1.0, %v1360_v42 }
  0x74   :  { %v138_v44 = vpop.permute.xlu1 %137 }
  0x75   :  { %v132_v45 = vpop.permute.xlu0 %131  ;;  %vm180_vm7 = vcmp.eq.s32.totalorder %v1567_v40, %v138_v44 }
  0x76   :  { %vm178_vm3 = vcmp.eq.s32.totalorder %v1567_v40, %v132_v45  ;;  %v1132_v1 = vsel %vm180_vm7, 1.0, %v1360_v42 }
  0x77   :  { %v165_v46 = vpop.permute.xlu2 %164  ;;  %v1130_v51 = vsel %vm178_vm3, 1.0, %v1360_v42 }
  0x78   :  { %vm189_vm2 = vcmp.eq.s32.totalorder %v1567_v40, %v165_v46 }
  0x79   :  { %v1575_v47 = vsel %vm189_vm2, 1.0, %v1360_v42 }
  0x7c   :  { %v141_v48 = vpop.permute.xlu1 %140 }
  0x7d   :  { %v135_v49 = vpop.permute.xlu0 %134  ;;  %vm181_vm8 = vcmp.eq.s32.totalorder %v1567_v40, %v141_v48 }
  0x7e   :  { %vm179_vm4 = vcmp.eq.s32.totalorder %v1567_v40, %v135_v49  ;;  %v1133_v2 = vsel %vm181_vm8, 1.0, %v1360_v42 }
  0x7f   :  { %v1131_v52 = vsel %vm179_vm4, 1.0, %v1360_v42  ;;  %v174_v53 = vpop.permute.xlu2 %173  ;;  %v227_v7 = vpack.c.bf16 %v1133_v2, %v1132_v1 }
  0x80   :  { %v226_v54 = vpack.c.bf16 %v1131_v52, %v1130_v51  ;;  %vm192_vm6 = vcmp.eq.s32.totalorder %v1567_v40, %v174_v53 }
  0x81   :  { %v325_v55 = vpop.f32.mrf.mxu0  ;;  %v1589_v57 = vsel %vm192_vm6, 1.0, %v1360_v42 }
  0x82   :  { %v326_v56 = vadd.f32 %v1581_v50, %v325_v55  ;;  %1186 = vmatmul.msk.bf16.vlgmr.msrb.gmra.mxu2 %vm519_vm5, %v226_v54 }
  0x84   :  { %v373_v58 = vmax.f32 %v326_v56, 0.0  ;;  %v153_v59 = vpop.permute.xlu1 %152 }
  0x85   :  { %v150_v60 = vpop.permute.xlu0 %149  ;;  %vm185_vm1 = vcmp.eq.s32.totalorder %v1567_v40, %v153_v59 }
  0x86   :  { %1162 = vmatmul.msk.f32.vlgmr.msra.gmra.mxu1 %vm259_vm0, %v373_v58  ;;  %vm184_vm2 = vcmp.eq.s32.totalorder %v1567_v40, %v150_v60  ;;  %v1137_v37 = vsel %vm185_vm1, 1.0, %v1360_v42 }
  0x87   :  { %v1136_v38 = vsel %vm184_vm2, 1.0, %v1360_v42 }
  0x88   :  { %v229_v44 = vpack.c.bf16 %v1137_v37, %v1136_v38 }
  0x89   :  { %v328_v61 = vpop.f32.mrf.mxu0 }
  0x8a   :  { %v329_v62 = vadd.f32 %v1581_v50, %v328_v61 }
  0x8c   :  { %v374_v63 = vmax.f32 %v329_v62, 0.0  ;;  %v162_v0 = vpop.permute.xlu1 %161  ;;  %v352_v29 = vpop.f32.mrf.mxu2 }
  0x8d   :  { %vm188_vm9 = vcmp.eq.s32.totalorder %v1567_v40, %v162_v0  ;;  %v159_v3 = vpop.permute.xlu0 %158  ;;  %v353_v30 = vadd.f32 %v1581_v50, %v352_v29 }
  0x8e   :  { %1163 = vmatmul.msk.f32.gmra.mxu1 %vm259_vm0, %v374_v63  ;;  %v1601_v4 = vsel %vm188_vm9, 1.0, %v1360_v42  ;;  %vm187_vm10 = vcmp.eq.s32.totalorder %v1567_v40, %v159_v3 }
  0x8f   :  { %v231_v5 = vpack.c.bf16 %v1575_v47, %v1601_v4  ;;  %v1607_v6 = vsel %vm187_vm10, 1.0, %v1360_v42  ;;  %v382_v31 = vmax.f32 %v353_v30, 0.0  ;;  %v1298_v47 = vld [vmem:[%s2016_s8 + $0x20] sm:$0xff]  ;;  %v1297_v4 = vld [vmem:[%s2016_s8 + $0x18] sm:$0xff] }
  0x90   :  { %v230_v8 = vpack.c.bf16 %v1607_v6, %v1571_v43  ;;  %v1301_v43 = vld [vmem:[%s2016_s8 + $0x38] sm:$0xff]  ;;  %v1300_v6 = vld [vmem:[%s2016_s8 + $0x30] sm:$0xff] }
  0x91   :  { %v331_v9 = vpop.f32.mrf.mxu0  ;;  %1171 = vmatmul.msk.f32.vlgmr.msra.gmra.mxu3 %vm259_vm0, %v382_v31 }
  0x92   :  { %v332_v10 = vadd.f32 %v1581_v50, %v331_v9  ;;  %1187 = vmatmul.msk.bf16.gmra.mxu2 %vm519_vm5, %v227_v7  ;;  %669 = vmatpush.bf16.msrb.mxu3 %v1301_v43  ;;  %v1299_v9 = vld [vmem:[%s2016_s8 + $0x28] sm:$0xff] }
  0x94   :  { %v375_v11 = vmax.f32 %v332_v10, 0.0  ;;  %v171_v12 = vpop.permute.xlu1 %170  ;;  %v355_v35 = vpop.f32.mrf.mxu2  ;;  %v1294_v10 = vld [vmem:[%s2016_s8] sm:$0xff] }
  0x95   :  { %vm191_vm11 = vcmp.eq.s32.totalorder %v1567_v40, %v171_v12  ;;  %v168_v13 = vpop.permute.xlu0 %167  ;;  %v356_v36 = vadd.f32 %v1581_v50, %v355_v35 }
  0x96   :  { %1164 = vmatmul.msk.f32.gmra.mxu1 %vm259_vm0, %v375_v11  ;;  %v1616_v14 = vsel %vm191_vm11, 1.0, %v1360_v42  ;;  %vm190_vm12 = vcmp.eq.s32.totalorder %v1567_v40, %v168_v13  ;;  %670 = vmatpush.bf16.msrb.mxu3 %v1300_v6  ;;  %v1711_v13 = vld [vmem:[%s2015_s7] ss:$0 sm:$0xff] }
  0x97   :  { %v1620_v15 = vsel %vm190_vm12, 1.0, %v1360_v42  ;;  %v383_v41 = vmax.f32 %v356_v36, 0.0 }
  0x98   :  { %v232_v16 = vpack.c.bf16 %v1616_v14, %v1620_v15 }
  0x99   :  { %v334_v17 = vpop.f32.mrf.mxu0  ;;  %1172 = vmatmul.msk.f32.gmra.mxu3 %vm259_vm0, %v383_v41 }
  0x9a   :  { %v335_v18 = vadd.f32 %v1581_v50, %v334_v17  ;;  %671 = vmatpush.bf16.msrb.mxu3 %v1299_v9 }
  0x9c   :  { %v376_v19 = vmax.f32 %v335_v18, 0.0  ;;  %v358_v48 = vpop.f32.mrf.mxu2 }
  0x9d   :  { %v177_v22 = vpop.permute.xlu0 %176  ;;  %v359_v49 = vadd.f32 %v1581_v50, %v358_v48 }
  0x9e   :  { %1165 = vmatmul.msk.f32.gmra.mxu1 %vm259_vm0, %v376_v19  ;;  %vm193_vm15 = vcmp.eq.s32.totalorder %v1567_v40, %v177_v22  ;;  %672 = vmatpush.bf16.msrb.mxu3 %v1298_v47  ;;  %v1308_v47 = vld [vmem:[%s2018_s10 + $0x30] sm:$0xff] }
  0x9f   :  { %v1634_v23 = vsel %vm193_vm15, 1.0, %v1360_v42  ;;  %v384_v51 = vmax.f32 %v359_v49, 0.0 }
  0xa0   :  { %v233_v25 = vpack.c.bf16 %v1634_v23, %v1589_v57 }
  0xa1   :  { %v337_v26 = vpop.f32.mrf.mxu0  ;;  %1173 = vmatmul.msk.f32.gmra.mxu3 %vm259_vm0, %v384_v51 }
  0xa2   :  { %v338_v27 = vadd.f32 %v1581_v50, %v337_v26  ;;  %1188 = vmatmul.msk.bf16.gmra.mxu2 %vm519_vm5, %v228_v24  ;;  %673 = vmatpush.bf16.msrb.mxu3 %v1297_v4 }
  0xa4   :  { %v377_v28 = vmax.f32 %v338_v27, 0.0  ;;  %v361_v54 = vpop.f32.mrf.mxu2 }
  0xa5   :  { %v362_v55 = vadd.f32 %v1581_v50, %v361_v54 }
  0xa6   :  { %1166 = vmatmul.msk.f32.gmra.mxu1 %vm259_vm0, %v377_v28 }
  0xa7   :  { %v385_v56 = vmax.f32 %v362_v55, 0.0 }
  0xa9   :  { %v340_v32 = vpop.f32.mrf.mxu0  ;;  %1174 = vmatmul.msk.f32.gmra.mxu3 %vm259_vm0, %v385_v56 }
  0xaa   :  { %v341_v33 = vadd.f32 %v1581_v50, %v340_v32 }
  0xac   :  { %v378_v34 = vmax.f32 %v341_v33, 0.0  ;;  %v364_v61 = vpop.f32.mrf.mxu2 }
  0xad   :  { %v365_v62 = vadd.f32 %v1581_v50, %v364_v61 }
  0xae   :  { %1167 = vmatmul.msk.f32.gmra.mxu1 %vm259_vm0, %v378_v34 }
  0xaf   :  { %v386_v63 = vmax.f32 %v365_v62, 0.0 }
  0xb1   :  { %v343_v45 = vpop.f32.mrf.mxu0  ;;  %1175 = vmatmul.msk.f32.gmra.mxu3 %vm259_vm0, %v386_v63 }
  0xb2   :  { %v344_v46 = vadd.f32 %v1581_v50, %v343_v45  ;;  %1189 = vmatmul.msk.bf16.gmra.mxu2 %vm519_vm5, %v229_v44 }
  0xb4   :  { %v379_v40 = vmax.f32 %v344_v46, 0.0  ;;  %v367_v0 = vpop.f32.mrf.mxu2 }
  0xb5   :  { %v368_v1 = vadd.f32 %v1581_v50, %v367_v0 }
  0xb6   :  { %1168 = vmatmul.msk.f32.gmra.mxu1 %vm259_vm0, %v379_v40 }
  0xb7   :  { %v387_v2 = vmax.f32 %v368_v1, 0.0 }
  0xb9   :  { %v346_v52 = vpop.f32.mrf.mxu0  ;;  %1176 = vmatmul.msk.f32.gmra.mxu3 %vm259_vm0, %v387_v2 }
  0xba   :  { %v347_v42 = vadd.f32 %v1581_v50, %v346_v52 }
  0xbc   :  { %v380_v53 = vmax.f32 %v347_v42, 0.0  ;;  %v370_v3 = vpop.f32.mrf.mxu2 }
  0xbd   :  { %v371_v7 = vadd.f32 %v1581_v50, %v370_v3 }
  0xbe   :  { %1169 = vmatmul.msk.f32.gmra.mxu1 %vm259_vm0, %v380_v53 }
  0xc1   :  { %v349_v58 = vpop.f32.mrf.mxu0 }
  0xc2   :  { %v350_v59 = vadd.f32 %v1581_v50, %v349_v58  ;;  %1190 = vmatmul.msk.bf16.gmra.mxu2 %vm519_vm5, %v230_v8  ;;  %v388_v8 = vmax.f32 %v371_v7, 0.0  ;;  %v1296_v50 = vld [vmem:[%s2016_s8 + $0x10] sm:$0xff] }
  0xc3   :  { %674 = vmatpush.bf16.msrb.mxu3 %v1296_v50  ;;  %v1307_v50 = vld [vmem:[%s2018_s10 + $0x28] sm:$0xff] }
  0xc4   :  { %v381_v60 = vmax.f32 %v350_v59, 0.0  ;;  %1177 = vmatmul.msk.f32.gmra.mxu3 %vm259_vm0, %v388_v8  ;;  %v1309_v8 = vld [vmem:[%s2018_s10 + $0x38] sm:$0xff] }
  0xc5   :  { %826 = vmatpush.bf16.msrb.mxu0 %v1309_v8 }
  0xc6   :  { %1170 = vmatmul.msk.f32.gmra.mxu1 %vm259_vm0, %v381_v60 }
  0xc9   :  { %827 = vmatpush.bf16.msrb.mxu0 %v1308_v47 }
  0xcd   :  { %828 = vmatpush.bf16.msrb.mxu0 %v1307_v50 }
  0xd2   :  { %1191 = vmatmul.msk.bf16.gmra.mxu2 %vm519_vm5, %v231_v5  ;;  %v1295_v5 = vld [vmem:[%s2016_s8 + $0x8] sm:$0xff] }
  0xd3   :  { %675 = vmatpush.bf16.msrb.mxu3 %v1295_v5 }
  0xd7   :  { %676 = vmatpush.bf16.msrb.mxu3 %v1294_v10 }
  0xe2   :  { %1192 = vmatmul.msk.bf16.gmra.mxu2 %vm519_vm5, %v232_v16 }
  0xf2   :  { %1193 = vmatmul.msk.bf16.gmra.mxu2 %vm519_vm5, %v233_v25 }
 0x103   :  { %v459_v11 = vpop.f32.mrf.mxu1 }
 0x104   :  { %v460_v14 = vadd.f32 %v1711_v13, %v459_v11  ;;  %v1306_v11 = vld [vmem:[%s2018_s10 + $0x20] sm:$0xff] }
 0x105   :  { %v553_v12 = vpop.f32.mrf.mxu2  ;;  %829 = vmatpush.bf16.msrb.mxu0 %v1306_v11 }
 0x106   :  { %v1715_v18 = vadd.f32 %v553_v12, %v460_v14 }
 0x10b   :  { %v462_v15 = vpop.f32.mrf.mxu1 }
 0x10c   :  { %v463_v16 = vadd.f32 %v1711_v13, %v462_v15 }
 0x10d   :  { %v555_v17 = vpop.f32.mrf.mxu2 }
 0x10e   :  { %v1717_v19 = vadd.f32 %v555_v17, %v463_v16 }
 0x110   :  { %v593_v57 = vpack.c.bf16 %v1717_v19, %v1715_v18 }
 0x112   :  { %677 = vmatmul.bf16.vlgmr.msrb.gmra.mxu3 %v593_v57 }
 0x113   :  { %v465_v20 = vpop.f32.mrf.mxu1 }
 0x114   :  { %v466_v22 = vadd.f32 %v1711_v13, %v465_v20  ;;  %v486_v40 = vpop.f32.mrf.mxu3  ;;  %v1305_v20 = vld [vmem:[%s2018_s10 + $0x18] sm:$0xff] }
 0x115   :  { %v558_v21 = vpop.f32.mrf.mxu2  ;;  %v487_v56 = vadd.f32 %v1711_v13, %v486_v40  ;;  %830 = vmatpush.bf16.msrb.mxu0 %v1305_v20 }
 0x116   :  { %v1723_v26 = vadd.f32 %v558_v21, %v466_v22  ;;  %v1304_v22 = vld [vmem:[%s2018_s10 + $0x10] sm:$0xff] }
 0x119   :  { %831 = vmatpush.bf16.msrb.mxu0 %v1304_v22 }
 0x11b   :  { %v468_v23 = vpop.f32.mrf.mxu1 }
 0x11c   :  { %v469_v24 = vadd.f32 %v1711_v13, %v468_v23  ;;  %v489_v53 = vpop.f32.mrf.mxu3 }
 0x11d   :  { %v560_v25 = vpop.f32.mrf.mxu2  ;;  %v490_v1 = vadd.f32 %v1711_v13, %v489_v53 }
 0x11e   :  { %v1725_v27 = vadd.f32 %v560_v25, %v469_v24 }
 0x120   :  { %v594_v28 = vpack.c.bf16 %v1725_v27, %v1723_v26 }
 0x122   :  { %682 = vmatmul.bf16.gmra.mxu3 %v594_v28  ;;  %v1303_v28 = vld [vmem:[%s2018_s10 + $0x8] sm:$0xff] }
 0x123   :  { %v471_v29 = vpop.f32.mrf.mxu1  ;;  %832 = vmatpush.bf16.msrb.mxu0 %v1303_v28 }
 0x124   :  { %v472_v31 = vadd.f32 %v1711_v13, %v471_v29  ;;  %v492_v61 = vpop.f32.mrf.mxu3 }
 0x125   :  { %v563_v30 = vpop.f32.mrf.mxu2  ;;  %v493_v2 = vadd.f32 %v1711_v13, %v492_v61 }
 0x126   :  { %v1731_v35 = vadd.f32 %v563_v30, %v472_v31 }
 0x12b   :  { %v474_v32 = vpop.f32.mrf.mxu1 }
 0x12c   :  { %v475_v33 = vadd.f32 %v1711_v13, %v474_v32  ;;  %v495_v0 = vpop.f32.mrf.mxu3  ;;  %v1302_v32 = vld [vmem:[%s2018_s10] sm:$0xff] }
 0x12d   :  { %v565_v34 = vpop.f32.mrf.mxu2  ;;  %v496_v5 = vadd.f32 %v1711_v13, %v495_v0  ;;  %833 = vmatpush.bf16.msrb.mxu0 %v1302_v32 }
 0x12e   :  { %v1733_v36 = vadd.f32 %v565_v34, %v475_v33  ;;  %v1804_v33 = vld [vmem:[%s2017_s9] ss:$0 sm:$0xff] }
 0x130   :  { %v595_v37 = vpack.c.bf16 %v1733_v36, %v1731_v35 }
 0x132   :  { %687 = vmatmul.bf16.gmra.mxu3 %v595_v37 }
 0x133   :  { %v477_v38 = vpop.f32.mrf.mxu1 }
 0x134   :  { %v478_v44 = vadd.f32 %v1711_v13, %v477_v38  ;;  %v498_v9 = vpop.f32.mrf.mxu3 }
 0x135   :  { %v568_v41 = vpop.f32.mrf.mxu2  ;;  %v499_v10 = vadd.f32 %v1711_v13, %v498_v9 }
 0x136   :  { %v1739_v49 = vadd.f32 %v568_v41, %v478_v44 }
 0x13b   :  { %v480_v45 = vpop.f32.mrf.mxu1 }
 0x13c   :  { %v481_v46 = vadd.f32 %v1711_v13, %v480_v45  ;;  %v501_v14 = vpop.f32.mrf.mxu3 }
 0x13d   :  { %v570_v48 = vpop.f32.mrf.mxu2  ;;  %v502_v23 = vadd.f32 %v1711_v13, %v501_v14 }
 0x13e   :  { %v1741_v51 = vadd.f32 %v570_v48, %v481_v46 }
 0x140   :  { %v596_v52 = vpack.c.bf16 %v1741_v51, %v1739_v49 }
 0x142   :  { %692 = vmatmul.bf16.gmra.mxu3 %v596_v52 }
 0x143   :  { %v483_v54 = vpop.f32.mrf.mxu1 }
 0x144   :  { %v484_v55 = vadd.f32 %v1711_v13, %v483_v54 }
 0x145   :  { %v573_v42 = vpop.f32.mrf.mxu2 }
 0x146   :  { %v1747_v59 = vadd.f32 %v573_v42, %v484_v55 }
 0x147   :  { %v504_v21 = vpop.f32.mrf.mxu3 }
 0x148   :  { %v505_v24 = vadd.f32 %v1711_v13, %v504_v21 }
 0x14d   :  { %v575_v58 = vpop.f32.mrf.mxu2 }
 0x14e   :  { %v1749_v60 = vadd.f32 %v575_v58, %v487_v56 }
 0x150   :  { %v597_v62 = vpack.c.bf16 %v1749_v60, %v1747_v59 }
 0x152   :  { %697 = vmatmul.bf16.gmra.mxu3 %v597_v62 }
 0x155   :  { %v578_v63 = vpop.f32.mrf.mxu2 }
 0x156   :  { %v1755_v3 = vadd.f32 %v578_v63, %v490_v1 }
 0x15d   :  { %v580_v43 = vpop.f32.mrf.mxu2 }
 0x15e   :  { %v1757_v6 = vadd.f32 %v580_v43, %v493_v2 }
 0x160   :  { %v598_v7 = vpack.c.bf16 %v1757_v6, %v1755_v3 }
 0x162   :  { %702 = vmatmul.bf16.gmra.mxu3 %v598_v7 }
 0x165   :  { %v583_v4 = vpop.f32.mrf.mxu2 }
 0x166   :  { %v1775_v15 = vadd.f32 %v583_v4, %v496_v5 }
 0x16d   :  { %v585_v12 = vpop.f32.mrf.mxu2 }
 0x16e   :  { %v1777_v16 = vadd.f32 %v585_v12, %v499_v10 }
 0x170   :  { %v599_v17 = vpack.c.bf16 %v1777_v16, %v1775_v15 }
 0x172   :  { %707 = vmatmul.bf16.gmra.mxu3 %v599_v17 }
 0x175   :  { %v588_v57 = vpop.f32.mrf.mxu2 }
 0x176   :  { %v1792_v29 = vadd.f32 %v588_v57, %v502_v23 }
 0x17d   :  { %v590_v25 = vpop.f32.mrf.mxu2 }
 0x17e   :  { %v1794_v30 = vadd.f32 %v590_v25, %v505_v24 }
 0x180   :  { %v600_v31 = vpack.c.bf16 %v1794_v30, %v1792_v29 }
 0x182   :  { %712 = vmatmul.bf16.gmra.mxu3 %v600_v31 }
 0x195   :  { %v678_v13 = vpop.f32.mrf.mxu3 }
 0x196   :  { %v679_v34 = vadd.f32 %v1804_v33, %v678_v13  ;;  %v1316_v13 = vld [vmem:[%s2020_s12 + $0x30] sm:$0xff] }
 0x198   :  { %v718_v38 = vmax.f32 %v679_v34, 0.0  ;;  %v1314_v34 = vld [vmem:[%s2020_s12 + $0x20] sm:$0xff] }
 0x19a   :  { %v1809_v45 = vadd.f32 %v718_v38, %v1715_v18 }
 0x19d   :  { %v680_v37 = vpop.f32.mrf.mxu3 }
 0x19e   :  { %v681_v41 = vadd.f32 %v1804_v33, %v680_v37 }
 0x1a0   :  { %v719_v44 = vmax.f32 %v681_v41, 0.0 }
 0x1a2   :  { %v1812_v46 = vadd.f32 %v719_v44, %v1717_v19 }
 0x1a4   :  { %v750_v40 = vpack.c.bf16 %v1812_v46, %v1809_v45 }
 0x1a5   :  { %v683_v48 = vpop.f32.mrf.mxu3 }
 0x1a6   :  { %834 = vmatmul.bf16.vlgmr.msrb.gmra.mxu0 %v750_v40  ;;  %v684_v52 = vadd.f32 %v1804_v33, %v683_v48 }
 0x1a8   :  { %v720_v53 = vmax.f32 %v684_v52, 0.0  ;;  %v1313_v52 = vld [vmem:[%s2020_s12 + $0x18] sm:$0xff] }
 0x1aa   :  { %v1819_v56 = vadd.f32 %v720_v53, %v1723_v26 }
 0x1ad   :  { %v685_v42 = vpop.f32.mrf.mxu3 }
 0x1ae   :  { %v686_v54 = vadd.f32 %v1804_v33, %v685_v42 }
 0x1b0   :  { %v721_v55 = vmax.f32 %v686_v54, 0.0  ;;  %v1312_v54 = vld [vmem:[%s2020_s12 + $0x10] sm:$0xff] }
 0x1b2   :  { %v1822_v18 = vadd.f32 %v721_v55, %v1725_v27 }
 0x1b4   :  { %v751_v19 = vpack.c.bf16 %v1822_v18, %v1819_v56 }
 0x1b5   :  { %v688_v58 = vpop.f32.mrf.mxu3 }
 0x1b6   :  { %839 = vmatmul.bf16.gmra.mxu0 %v751_v19  ;;  %v689_v61 = vadd.f32 %v1804_v33, %v688_v58 }
 0x1b8   :  { %v722_v63 = vmax.f32 %v689_v61, 0.0  ;;  %v1310_v61 = vld [vmem:[%s2020_s12] sm:$0xff] }
 0x1ba   :  { %v1829_v2 = vadd.f32 %v722_v63, %v1731_v35 }
 0x1bd   :  { %v690_v62 = vpop.f32.mrf.mxu3 }
 0x1be   :  { %v691_v0 = vadd.f32 %v1804_v33, %v690_v62 }
 0x1c0   :  { %v723_v1 = vmax.f32 %v691_v0, 0.0 }
 0x1c2   :  { %v1832_v26 = vadd.f32 %v723_v1, %v1733_v36 }
 0x1c4   :  { %v752_v27 = vpack.c.bf16 %v1832_v26, %v1829_v2 }
 0x1c5   :  { %v693_v43 = vpop.f32.mrf.mxu3 }
 0x1c6   :  { %844 = vmatmul.bf16.gmra.mxu0 %v752_v27  ;;  %v694_v7 = vadd.f32 %v1804_v33, %v693_v43 }
 0x1c8   :  { %v724_v9 = vmax.f32 %v694_v7, 0.0 }
 0x1ca   :  { %v1839_v50 = vadd.f32 %v724_v9, %v1739_v49 }
 0x1cd   :  { %v695_v8 = vpop.f32.mrf.mxu3 }
 0x1ce   :  { %v696_v47 = vadd.f32 %v1804_v33, %v695_v8 }
 0x1d0   :  { %v725_v4 = vmax.f32 %v696_v47, 0.0 }
 0x1d2   :  { %v1842_v35 = vadd.f32 %v725_v4, %v1741_v51 }
 0x1d4   :  { %v753_v36 = vpack.c.bf16 %v1842_v35, %v1839_v50 }
 0x1d5   :  { %v698_v5 = vpop.f32.mrf.mxu3 }
 0x1d6   :  { %849 = vmatmul.bf16.gmra.mxu0 %v753_v36  ;;  %v699_v10 = vadd.f32 %v1804_v33, %v698_v5 }
 0x1d8   :  { %v726_v12 = vmax.f32 %v699_v10, 0.0 }
 0x1da   :  { %v1849_v57 = vadd.f32 %v726_v12, %v1747_v59 }
 0x1dd   :  { %v700_v11 = vpop.f32.mrf.mxu3 }
 0x1de   :  { %v701_v14 = vadd.f32 %v1804_v33, %v700_v11 }
 0x1e0   :  { %v727_v17 = vmax.f32 %v701_v14, 0.0 }
 0x1e2   :  { %v1852_v49 = vadd.f32 %v727_v17, %v1749_v60  ;;  %v1317_v60 = vld [vmem:[%s2020_s12 + $0x38] sm:$0xff] }
 0x1e3   :  { %983 = vmatpush.bf16.msrb.mxu1 %v1317_v60 }
 0x1e4   :  { %v754_v51 = vpack.c.bf16 %v1852_v49, %v1849_v57 }
 0x1e5   :  { %v703_v20 = vpop.f32.mrf.mxu3 }
 0x1e6   :  { %854 = vmatmul.bf16.gmra.mxu0 %v754_v51  ;;  %v704_v21 = vadd.f32 %v1804_v33, %v703_v20 }
 0x1e7   :  { %984 = vmatpush.bf16.msrb.mxu1 %v1316_v13 }
 0x1e8   :  { %v728_v23 = vmax.f32 %v704_v21, 0.0 }
 0x1ea   :  { %v1859_v28 = vadd.f32 %v728_v23, %v1755_v3  ;;  %v1315_v3 = vld [vmem:[%s2020_s12 + $0x28] sm:$0xff] }
 0x1eb   :  { %985 = vmatpush.bf16.msrb.mxu1 %v1315_v3 }
 0x1ed   :  { %v705_v22 = vpop.f32.mrf.mxu3 }
 0x1ee   :  { %v706_v24 = vadd.f32 %v1804_v33, %v705_v22 }
 0x1ef   :  { %986 = vmatpush.bf16.msrb.mxu1 %v1314_v34 }
 0x1f0   :  { %v729_v25 = vmax.f32 %v706_v24, 0.0 }
 0x1f2   :  { %v1862_v59 = vadd.f32 %v729_v25, %v1757_v6 }
 0x1f3   :  { %987 = vmatpush.bf16.msrb.mxu1 %v1313_v52 }
 0x1f4   :  { %v755_v31 = vpack.c.bf16 %v1862_v59, %v1859_v28 }
 0x1f5   :  { %v708_v32 = vpop.f32.mrf.mxu3 }
 0x1f6   :  { %859 = vmatmul.bf16.gmra.mxu0 %v755_v31  ;;  %v709_v6 = vadd.f32 %v1804_v33, %v708_v32 }
 0x1f7   :  { %988 = vmatpush.bf16.msrb.mxu1 %v1312_v54 }
 0x1f8   :  { %v730_v38 = vmax.f32 %v709_v6, 0.0 }
 0x1fa   :  { %v1881_v40 = vadd.f32 %v730_v38, %v1775_v15 }
 0x1fd   :  { %v710_v37 = vpop.f32.mrf.mxu3 }
 0x1fe   :  { %v711_v41 = vadd.f32 %v1804_v33, %v710_v37 }
 0x200   :  { %v731_v44 = vmax.f32 %v711_v41, 0.0 }
 0x202   :  { %v1884_v48 = vadd.f32 %v731_v44, %v1777_v16  ;;  %v1311_v16 = vld [vmem:[%s2020_s12 + $0x8] sm:$0xff] }
 0x203   :  { %989 = vmatpush.bf16.msrb.mxu1 %v1311_v16 }
 0x204   :  { %v756_v42 = vpack.c.bf16 %v1884_v48, %v1881_v40 }
 0x205   :  { %v713_v53 = vpop.f32.mrf.mxu3 }
 0x206   :  { %864 = vmatmul.bf16.gmra.mxu0 %v756_v42  ;;  %v714_v15 = vadd.f32 %v1804_v33, %v713_v53 }
 0x207   :  { %990 = vmatpush.bf16.msrb.mxu1 %v1310_v61 }
 0x208   :  { %v732_v19 = vmax.f32 %v714_v15, 0.0 }
 0x20a   :  { %v1903_v63 = vadd.f32 %v732_v19, %v1792_v29 }
 0x20d   :  { %v715_v55 = vpop.f32.mrf.mxu3 }
 0x20e   :  { %v716_v58 = vadd.f32 %v1804_v33, %v715_v55  ;;  %v1913_v33 = vld [vmem:[%s2019_s11] ss:$0 sm:$0xff] }
 0x210   :  { %v733_v62 = vmax.f32 %v716_v58, 0.0 }
 0x212   :  { %v1906_v0 = vadd.f32 %v733_v62, %v1794_v30 }
 0x214   :  { %v757_v1 = vpack.c.bf16 %v1906_v0, %v1903_v63 }
 0x216   :  { %869 = vmatmul.bf16.gmra.mxu0 %v757_v1 }
 0x223   :  { %v835_v27 = vpop.f32.mrf.mxu0 }
 0x224   :  { %v836_v43 = vadd.f32 %v1913_v33, %v835_v27 }
 0x226   :  { %v875_v8 = vmax.f32 %v836_v43, 0.0 }
 0x228   :  { %v1918_v30 = vadd.f32 %v875_v8, %v1809_v45 }
 0x22b   :  { %v837_v7 = vpop.f32.mrf.mxu0 }
 0x22c   :  { %v838_v29 = vadd.f32 %v1913_v33, %v837_v7 }
 0x22e   :  { %v876_v9 = vmax.f32 %v838_v29, 0.0 }
 0x230   :  { %v1921_v47 = vadd.f32 %v876_v9, %v1812_v46 }
 0x232   :  { %v907_v4 = vpack.c.bf16 %v1921_v47, %v1918_v30 }
 0x233   :  { %v840_v36 = vpop.f32.mrf.mxu0 }
 0x234   :  { %991 = vmatmul.bf16.vlgmr.msrb.gmra.mxu1 %v907_v4  ;;  %v841_v5 = vadd.f32 %v1913_v33, %v840_v36 }
 0x236   :  { %v877_v11 = vmax.f32 %v841_v5, 0.0 }
 0x238   :  { %v1928_v17 = vadd.f32 %v877_v11, %v1819_v56 }
 0x23b   :  { %v842_v10 = vpop.f32.mrf.mxu0 }
 0x23c   :  { %v843_v12 = vadd.f32 %v1913_v33, %v842_v10 }
 0x23e   :  { %v878_v14 = vmax.f32 %v843_v12, 0.0 }
 0x240   :  { %v1931_v45 = vadd.f32 %v878_v14, %v1822_v18 }
 0x242   :  { %v908_v46 = vpack.c.bf16 %v1931_v45, %v1928_v17 }
 0x243   :  { %v845_v51 = vpop.f32.mrf.mxu0 }
 0x244   :  { %996 = vmatmul.bf16.gmra.mxu1 %v908_v46  ;;  %v846_v20 = vadd.f32 %v1913_v33, %v845_v51 }
 0x246   :  { %v879_v22 = vmax.f32 %v846_v20, 0.0 }
 0x248   :  { %v1938_v25 = vadd.f32 %v879_v22, %v1829_v2 }
 0x24b   :  { %v847_v21 = vpop.f32.mrf.mxu0 }
 0x24c   :  { %v848_v23 = vadd.f32 %v1913_v33, %v847_v21 }
 0x24e   :  { %v880_v24 = vmax.f32 %v848_v23, 0.0 }
 0x250   :  { %v1941_v56 = vadd.f32 %v880_v24, %v1832_v26 }
 0x252   :  { %v909_v18 = vpack.c.bf16 %v1941_v56, %v1938_v25 }
 0x253   :  { %v850_v60 = vpop.f32.mrf.mxu0 }
 0x254   :  { %1001 = vmatmul.bf16.gmra.mxu1 %v909_v18  ;;  %v851_v31 = vadd.f32 %v1913_v33, %v850_v60 }
 0x256   :  { %v881_v13 = vmax.f32 %v851_v31, 0.0 }
 0x258   :  { %v1948_v34 = vadd.f32 %v881_v13, %v1839_v50 }
 0x25b   :  { %v852_v32 = vpop.f32.mrf.mxu0 }
 0x25c   :  { %v853_v3 = vadd.f32 %v1913_v33, %v852_v32 }
 0x25e   :  { %v882_v6 = vmax.f32 %v853_v3, 0.0 }
 0x260   :  { %v1951_v2 = vadd.f32 %v882_v6, %v1842_v35 }
 0x262   :  { %v910_v26 = vpack.c.bf16 %v1951_v2, %v1948_v34 }
 0x263   :  { %v855_v37 = vpop.f32.mrf.mxu0 }
 0x264   :  { %1006 = vmatmul.bf16.gmra.mxu1 %v910_v26  ;;  %v856_v38 = vadd.f32 %v1913_v33, %v855_v37 }
 0x266   :  { %v883_v44 = vmax.f32 %v856_v38, 0.0 }
 0x268   :  { %v1958_v53 = vadd.f32 %v883_v44, %v1849_v57 }
 0x26b   :  { %v857_v41 = vpop.f32.mrf.mxu0 }
 0x26c   :  { %v858_v52 = vadd.f32 %v1913_v33, %v857_v41 }
 0x26e   :  { %v884_v42 = vmax.f32 %v858_v52, 0.0 }
 0x270   :  { %v1961_v50 = vadd.f32 %v884_v42, %v1852_v49 }
 0x272   :  { %v911_v35 = vpack.c.bf16 %v1961_v50, %v1958_v53 }
 0x273   :  { %v860_v54 = vpop.f32.mrf.mxu0 }
 0x274   :  { %1011 = vmatmul.bf16.gmra.mxu1 %v911_v35  ;;  %v861_v15 = vadd.f32 %v1913_v33, %v860_v54 }
 0x276   :  { %v885_v55 = vmax.f32 %v861_v15, 0.0 }
 0x278   :  { %v1968_v61 = vadd.f32 %v885_v55, %v1859_v28 }
 0x27b   :  { %v862_v16 = vpop.f32.mrf.mxu0 }
 0x27c   :  { %v863_v19 = vadd.f32 %v1913_v33, %v862_v16 }
 0x27e   :  { %v886_v58 = vmax.f32 %v863_v19, 0.0 }
 0x280   :  { %v1971_v57 = vadd.f32 %v886_v58, %v1862_v59 }
 0x282   :  { %v912_v49 = vpack.c.bf16 %v1971_v57, %v1968_v61 }
 0x283   :  { %v865_v62 = vpop.f32.mrf.mxu0 }
 0x284   :  { %1016 = vmatmul.bf16.gmra.mxu1 %v912_v49  ;;  %v866_v1 = vadd.f32 %v1913_v33, %v865_v62 }
 0x286   :  { %v887_v43 = vmax.f32 %v866_v1, 0.0 }
 0x288   :  { %v903_v29 = vadd.f32 %v887_v43, %v1881_v40 }
 0x28b   :  { %v867_v27 = vpop.f32.mrf.mxu0 }
 0x28c   :  { %v868_v7 = vadd.f32 %v1913_v33, %v867_v27 }
 0x28e   :  { %v888_v8 = vmax.f32 %v868_v7, 0.0 }
 0x290   :  { %v904_v28 = vadd.f32 %v888_v8, %v1884_v48 }
 0x292   :  { %v913_v9 = vpack.c.bf16 %v904_v28, %v903_v29 }
 0x293   :  { %v870_v4 = vpop.f32.mrf.mxu0 }
 0x294   :  { %1021 = vmatmul.bf16.gmra.mxu1 %v913_v9  ;;  %v871_v59 = vadd.f32 %v1913_v33, %v870_v4 }
 0x296   :  { %v889_v5 = vmax.f32 %v871_v59, 0.0 }
 0x298   :  { %v905_v12 = vadd.f32 %v889_v5, %v1903_v63 }
 0x29b   :  { %v872_v36 = vpop.f32.mrf.mxu0 }
 0x29c   :  { %v873_v10 = vadd.f32 %v1913_v33, %v872_v36 }
 0x29e   :  { %v890_v11 = vmax.f32 %v873_v10, 0.0 }
 0x2a0   :  { %v906_v14 = vadd.f32 %v890_v11, %v1906_v0  ;;  %v1331_v0 = vld [vmem:[%s2021_s13] ss:$0 sm:$0xff] }
 0x2a2   :  { %v914_v46 = vpack.c.bf16 %v906_v14, %v905_v12 }
 0x2a4   :  { %1026 = vmatmul.bf16.gmra.mxu1 %v914_v46 }
 0x2b1   :  { %v1983_v51 = vpop.f32.mrf.mxu1 }
 0x2b9   :  { %v994_v40 = vpop.f32.mrf.mxu1 }
 0x2c1   :  { %v997_v48 = vpop.f32.mrf.mxu1 }
 0x2c9   :  { %v999_v20 = vpop.f32.mrf.mxu1 }
 0x2ca   :  { %v1000_v11 = vadd.f32 %v1331_v0, %v999_v20 }
 0x2d1   :  { %v1002_v21 = vpop.f32.mrf.mxu1 }
 0x2d9   :  { %v1004_v22 = vpop.f32.mrf.mxu1 }
 0x2da   :  { %v1005_v59 = vadd.f32 %v1331_v0, %v1004_v22  ;;  %v995_v22 = vadd.f32 %v1331_v0, %v994_v40 }
 0x2dc   :  { %v1033_v20 = vmax.f32 %v995_v22, 0.0 }
 0x2e1   :  { %v1007_v23 = vpop.f32.mrf.mxu1 }
 0x2e2   :  { %v1008_v8 = vadd.f32 %v1331_v0, %v1007_v23  ;;  %v1035_v23 = vmax.f32 %v1000_v11, 0.0 }
 0x2e4   :  { %v1038_v10 = vmax.f32 %v1008_v8, 0.0 }
 0x2e9   :  { %v1009_v24 = vpop.f32.mrf.mxu1 }
 0x2ea   :  { %v1010_v27 = vadd.f32 %v1331_v0, %v1009_v24 }
 0x2ec   :  { %v1039_v36 = vmax.f32 %v1010_v27, 0.0 }
 0x2f1   :  { %v1012_v18 = vpop.f32.mrf.mxu1 }
 0x2f2   :  { %v1013_v49 = vadd.f32 %v1331_v0, %v1012_v18 }
 0x2f4   :  { %v1040_v9 = vmax.f32 %v1013_v49, 0.0 }
 0x2f9   :  { %v1014_v60 = vpop.f32.mrf.mxu1 }
 0x2fa   :  { %v1015_v55 = vadd.f32 %v1331_v0, %v1014_v60 }
 0x2fc   :  { %v1041_v43 = vmax.f32 %v1015_v55, 0.0 }
 0x2fe   :  { %v1057_v5 = vadd.f32 %v1041_v43, %v1961_v50 }
 0x301   :  { %v1017_v31 = vpop.f32.mrf.mxu1 }
 0x302   :  { %v1018_v54 = vadd.f32 %v1331_v0, %v1017_v31 }
 0x304   :  { %v1042_v62 = vmax.f32 %v1018_v54, 0.0 }
 0x306   :  { %v1058_v4 = vadd.f32 %v1042_v62, %v1968_v61  ;;  %v1054_v61 = vadd.f32 %v1038_v10, %v1948_v34  ;;  %v1065_v34 = vshrl.u32 %v112_v39, 7 }
 0x309   :  { %v1019_v33 = vpop.f32.mrf.mxu1 }
 0x30a   :  { %v1020_v52 = vadd.f32 %v1331_v0, %v1019_v33 }
 0x30c   :  { %v1043_v19 = vmax.f32 %v1020_v52, 0.0 }
 0x30e   :  { %v1059_v7 = vadd.f32 %v1043_v19, %v1971_v57  ;;  %v1055_v57 = vadd.f32 %v1039_v36, %v1951_v2  ;;  %v1051_v2 = vadd.f32 %v1035_v23, %v1931_v45  ;;  %v1361_v45 = vmov 1.0  }
 0x311   :  { %v1022_v32 = vpop.f32.mrf.mxu1 }
 0x312   :  { %v1023_v38 = vadd.f32 %v1331_v0, %v1022_v32 }
 0x314   :  { %v1044_v15 = vmax.f32 %v1023_v38, 0.0 }
 0x316   :  { %v1060_v1 = vadd.f32 %v1044_v15, %v903_v29  ;;  %v1056_v29 = vadd.f32 %v1040_v9, %v1958_v53 }
 0x319   :  { %v1024_v13 = vpop.f32.mrf.mxu1 }
 0x31a   :  { %v1025_v26 = vadd.f32 %v1331_v0, %v1024_v13 }
 0x31c   :  { %v1045_v42 = vmax.f32 %v1025_v26, 0.0 }
 0x31e   :  { %v1061_v58 = vadd.f32 %v1045_v42, %v904_v28  ;;  %v1003_v28 = vadd.f32 %v1331_v0, %v1002_v21  ;;  %v993_v21 = vadd.f32 %v1331_v0, %v1983_v51  ;;  %v1049_v51 = vadd.f32 %v1033_v20, %v1921_v47 }
 0x320   :  { %v1036_v46 = vmax.f32 %v1003_v28, 0.0 }
 0x321   :  { %v1027_v63 = vpop.f32.mrf.mxu1 }
 0x322   :  { %v1028_v3 = vadd.f32 %v1331_v0, %v1027_v63  ;;  %v1052_v53 = vadd.f32 %v1036_v46, %v1938_v25 }
 0x324   :  { %v1046_v41 = vmax.f32 %v1028_v3, 0.0 }
 0x326   :  { %v1062_v16 = vadd.f32 %v1046_v41, %v905_v12  ;;  %v1037_v12 = vmax.f32 %v1005_v59, 0.0 }
 0x328   :  { %v1053_v50 = vadd.f32 %v1037_v12, %v1941_v56  ;;  %v1332_v56 = vld [vmem:[%s2010_s2] ss:$0 sm:$0xff] }
 0x329   :  { %v1029_v6 = vpop.f32.mrf.mxu1  ;;  %vm1068_vm0 = vcmp.eq.s32.totalorder %v1065_v34, %v1332_v56 }
 0x32a   :  { %v1030_v37 = vadd.f32 %v1331_v0, %v1029_v6 }
 0x32c   :  { %v1047_v44 = vmax.f32 %v1030_v37, 0.0 }
 0x32e   :  { %v1063_v35 = vadd.f32 %v1047_v44, %v906_v14  ;;  %v998_v14 = vadd.f32 %v1331_v0, %v997_v48  ;;  %v1032_v48 = vmax.f32 %v993_v21, 0.0 }
 0x330   :  { %1072 = vmatpush.msra.mxu2 %v1063_v35  ;;  %v1034_v24 = vmax.f32 %v998_v14, 0.0  ;;  %v1048_v25 = vadd.f32 %v1032_v48, %v1918_v30 }
 0x332   :  { %1073 = vmatpush.msra.mxu2 %v1062_v16  ;;  %v1050_v18 = vadd.f32 %v1034_v24, %v1928_v17 }
 0x334   :  { %1074 = vmatpush.msra.mxu2 %v1061_v58 }
 0x336   :  { %1075 = vmatpush.msra.mxu2 %v1060_v1 }
 0x338   :  { %1076 = vmatpush.msra.mxu2 %v1059_v7 }
 0x33a   :  { %1077 = vmatpush.msra.mxu2 %v1058_v4 }
 0x33c   :  { %1078 = vmatpush.msra.mxu2 %v1057_v5 }
 0x33e   :  { %1079 = vmatpush.msra.mxu2 %v1056_v29 }
 0x340   :  { %1080 = vmatpush.msra.mxu2 %v1055_v57 }
 0x342   :  { %1081 = vmatpush.msra.mxu2 %v1054_v61 }
 0x344   :  { %1082 = vmatpush.msra.mxu2 %v1053_v50 }
 0x346   :  { %1083 = vmatpush.msra.mxu2 %v1052_v53 }
 0x348   :  { %1084 = vmatpush.msra.mxu2 %v1051_v2 }
 0x34a   :  { %1085 = vmatpush.msra.mxu2 %v1050_v18 }
 0x34c   :  { %1086 = vmatpush.msra.mxu2 %v1049_v51 }
 0x34e   :  { %1087 = vmatpush.msra.mxu2 %v1048_v25 }
 0x34f   :  { %1291 = vmatmul.msk.f32.vlgmr.msra.gmra.mxu2 %vm1068_vm0, %v1361_v45 }
 0x3d2   :  { %v1089_v39 = vpop.f32.mrf.mxu2 }
 0x3d3   :  { %1098 = vst [vmem:[#allocation3] sm:$0xff] %v1089_v39 }
 0x3d4   :  { %1109 = dma.vmem_to_hbm [thread:$0]  %s1105_s19, 128, %s1107_s21, [#allocation4]  }
 0x3d5   :  { %1357 = dma.done.wait [#allocation4], 128  }
 0x3d6   :  { %1358 = vsyncadd [#allocation4], 4294967168 }
 0x3d7   :  { %1114 = vsyncpa [#allocation4], 1 }

</bundles_post_ra>
